<compile_context>
chip_gen: v5e
topology: v5e:2x2
jax: 0.10.0
libtpu: 0.0.40
codegen_flags: <defaults>
</compile_context>

<pallas_src>
import functools

import jax
import jax.numpy as jnp
from jax.experimental import pallas as pl
from jax.experimental.pallas import tpu as pltpu

_VMEM_LIMIT_BYTES = 48 * 1024 * 1024   # below v7x physical (64 MiB), ample on v5e/v6e
_TILE_VMEM_BUDGET = 36 * 1024 * 1024   # double-buffered tile budget for collapsed-K path


def _round_up(x, m):
    return (x + m - 1) // m * m


def _conv1d_kernel_fused_k(x_ref, w_ref, b_ref, o_ref):
    # Single full-K contraction per (i, j) tile; bias fused, f32 accumulate.
    acc = jnp.dot(x_ref[...], w_ref[...], preferred_element_type=jnp.float32)
    o_ref[...] = (acc + b_ref[...]).astype(o_ref.dtype)


def _conv1d_kernel_tiled_k(x_ref, w_ref, b_ref, o_ref, acc_ref):
    # Large-nx fallback: K-innermost grid with an f32 accumulator scratch.
    k = pl.program_id(2)

    @pl.when(k == 0)
    def _():
        acc_ref[...] = jnp.zeros_like(acc_ref)

    acc_ref[...] += jnp.dot(x_ref[...], w_ref[...], preferred_element_type=jnp.float32)

    @pl.when(k == pl.num_programs(2) - 1)
    def _():
        o_ref[...] = (acc_ref[...] + b_ref[...]).astype(o_ref.dtype)


@functools.partial(jax.jit, static_argnames=("tm", "tn", "tk", "compute_dtype"))
def conv1d_pallas(x, weight, bias, *, tm=256, tn=256, tk=512, compute_dtype=None):
    """y = x @ weight + bias, x: (..., nx), weight: (nx, nf), bias: (nf,)."""
    nx, nf = weight.shape
    assert x.shape[-1] == nx
    lead = x.shape[:-1]
    out_dtype = x.dtype

    x2d = x.reshape(-1, nx)
    M = x2d.shape[0]

    if compute_dtype is not None:
        # e.g. jnp.bfloat16 on v6e/v7x: halves HBM/VMEM traffic, full-rate MXU;
        # accumulation stays f32 via preferred_element_type below.
        x2d = x2d.astype(compute_dtype)
        weight = weight.astype(compute_dtype)
    bias_f32 = bias.astype(jnp.float32)

    in_bytes = x2d.dtype.itemsize
    out_bytes = jnp.dtype(out_dtype).itemsize

    # MXU-scale tiles, aligned to the (8, 128) layout rules and clipped to the
    # (padded) problem size so tiny shapes don't over-pad.
    tm_eff = min(_round_up(tm, 8), _round_up(M, 8))
    tn_eff = min(_round_up(tn, 128), _round_up(nf, 128))
    m_pad = _round_up(M, tm_eff)
    nf_pad = _round_up(nf, tn_eff)

    # Zero-pad rows / output features (cheap) so large lane-dense tiles remain
    # usable for arbitrary shapes; result is sliced back at the end.
    if m_pad != M:
        x2d = jnp.pad(x2d, ((0, m_pad - M), (0, 0)))
    if nf_pad != nf:
        weight = jnp.pad(weight, ((0, 0), (0, nf_pad - nf)))
        bias_f32 = jnp.pad(bias_f32, (0, nf_pad - nf))
    bias2d = bias_f32.reshape(1, nf_pad)

    gm, gn = m_pad // tm_eff, nf_pad // tn_eff

    # Collapse the K grid axis whenever double-buffered full-K tiles fit the
    # VMEM budget (true for GPT-2 nx up to a few thousand): no accumulator
    # scratch, no init/finalize steps, 1/3 of the grid-step overhead.
    fused_bytes = 2 * (tm_eff * nx * in_bytes
                       + nx * tn_eff * in_bytes
                       + tm_eff * tn_eff * out_bytes) + 2 * tn_eff * 4
    collapse_k = fused_bytes <= _TILE_VMEM_BUDGET

    cost = pl.CostEstimate(
        flops=2 * M * nx * nf,
        transcendentals=0,
        bytes_accessed=(m_pad * nx * in_bytes            # x read once
                        + gm * nx * nf_pad * in_bytes    # weight re-fetched per row tile
                        + m_pad * nf_pad * out_bytes     # output write
                        + nf_pad * 4),                   # bias
    )

    if collapse_k:
        out2d = pl.pallas_call(
            _conv1d_kernel_fused_k,
            out_shape=jax.ShapeDtypeStruct((m_pad, nf_pad), out_dtype),
            grid_spec=pltpu.PrefetchScalarGridSpec(
                num_scalar_prefetch=0,
                grid=(gm, gn),
                in_specs=[
                    pl.BlockSpec((tm_eff, nx), lambda i, j: (i, 0)),     # x row tile, full K
                    pl.BlockSpec((nx, tn_eff), lambda i, j: (0, j)),     # weight col tile, full K
                    pl.BlockSpec((1, tn_eff), lambda i, j: (0, j)),      # bias tile
                ],
                out_specs=pl.BlockSpec((tm_eff, tn_eff), lambda i, j: (i, j)),
            ),
            compiler_params=pltpu.CompilerParams(
                dimension_semantics=("parallel", "parallel"),
                vmem_limit_bytes=_VMEM_LIMIT_BYTES,
            ),
            cost_estimate=cost,
        )(x2d, weight, bias2d)
    else:
        # Very large nx: tile K with an f32 accumulator, bias fused on last K step.
        tk_eff = min(_round_up(tk, 128), _round_up(nx, 128))
        nx_pad = _round_up(nx, tk_eff)
        if nx_pad != nx:
            x2d = jnp.pad(x2d, ((0, 0), (0, nx_pad - nx)))
            weight = jnp.pad(weight, ((0, nx_pad - nx), (0, 0)))
        gk = nx_pad // tk_eff

        out2d = pl.pallas_call(
            _conv1d_kernel_tiled_k,
            out_shape=jax.ShapeDtypeStruct((m_pad, nf_pad), out_dtype),
            grid_spec=pltpu.PrefetchScalarGridSpec(
                num_scalar_prefetch=0,
                grid=(gm, gn, gk),
                in_specs=[
                    pl.BlockSpec((tm_eff, tk_eff), lambda i, j, k: (i, k)),
                    pl.BlockSpec((tk_eff, tn_eff), lambda i, j, k: (k, j)),
                    pl.BlockSpec((1, tn_eff), lambda i, j, k: (0, j)),
                ],
                out_specs=pl.BlockSpec((tm_eff, tn_eff), lambda i, j, k: (i, j)),
                scratch_shapes=[pltpu.VMEM((tm_eff, tn_eff), jnp.float32)],
            ),
            compiler_params=pltpu.CompilerParams(
                dimension_semantics=("parallel", "parallel", "arbitrary"),
                vmem_limit_bytes=_VMEM_LIMIT_BYTES,
            ),
            cost_estimate=cost,
        )(x2d, weight, bias2d)

    if m_pad != M or nf_pad != nf:
        out2d = out2d[:M, :nf]
    return out2d.reshape(*lead, nf)


if __name__ == "__main__":
    # Deterministic parameter init mirroring the module's __init__:
    #   weight ~ Normal(0, 0.02) with shape (nx, nf); bias = zeros(nf)
    key = jax.random.PRNGKey(0)
    k1, k2, k3, k4 = jax.random.split(key, 4)

    # Case 1: small GPT-2-like shape (exercises nf padding 64 -> 128 lanes).
    batch, seq, nx, nf = 2, 8, 32, 64
    x = jax.random.normal(k1, (batch, seq, nx), dtype=jnp.float32)
    weight = 0.02 * jax.random.normal(k2, (nx, nf), dtype=jnp.float32)
    bias = jnp.zeros((nf,), dtype=jnp.float32)

    y = jax.block_until_ready(conv1d_pallas(x, weight, bias))
    y_ref = (x.reshape(-1, nx) @ weight + bias).reshape(batch, seq, nf)
    assert y.shape == (batch, seq, nf)
    assert jnp.allclose(y, y_ref, atol=1e-5, rtol=1e-5)

    # Case 2: ragged shapes (exercises M and nf zero-padding + slicing).
    batch2, seq2, nx2, nf2 = 3, 5, 96, 200
    x2 = jax.random.normal(k3, (batch2, seq2, nx2), dtype=jnp.float32)
    weight2 = 0.02 * jax.random.normal(k4, (nx2, nf2), dtype=jnp.float32)
    bias2 = jnp.zeros((nf2,), dtype=jnp.float32)

    y2 = jax.block_until_ready(conv1d_pallas(x2, weight2, bias2))
    y2_ref = (x2.reshape(-1, nx2) @ weight2 + bias2).reshape(batch2, seq2, nf2)
    assert y2.shape == (batch2, seq2, nf2)
    assert jnp.allclose(y2, y2_ref, atol=1e-5, rtol=1e-5)

    print("KERNEL_OK")
</pallas_src>

<mosaic_0001>
module attributes {stable_mosaic.version = 11 : i64} {
  func.func @_conv1d_kernel_fused_k(%arg0: i32, %arg1: i32, %arg2: memref<16x32xf32, #tpu.memory_space<vmem>>, %arg3: memref<32x128xf32, #tpu.memory_space<vmem>>, %arg4: memref<1x128xf32, #tpu.memory_space<vmem>>, %arg5: memref<16x128xf32, #tpu.memory_space<vmem>>) attributes {dimension_semantics = [#tpu.dimension_semantics<parallel>, #tpu.dimension_semantics<parallel>], iteration_bounds = array<i64: 1, 1>, scalar_prefetch = 0 : i64, scratch_operands = 0 : i64, tpu.core_type = #tpu.core_type<tc>, window_params = [{transform_indices = @transform_0, window_bounds = array<i64: 16, 32>}, {transform_indices = @transform_1, window_bounds = array<i64: 32, 128>}, {transform_indices = @transform_2, window_bounds = array<i64: 1, 128>}, {transform_indices = @transform_3, window_bounds = array<i64: 16, 128>}]} {
    %c0 = arith.constant 0 : index
    %c0_0 = arith.constant 0 : index
    %0 = vector.load %arg2[%c0, %c0_0] : memref<16x32xf32, #tpu.memory_space<vmem>>, vector<16x32xf32>
    %c0_1 = arith.constant 0 : index
    %c0_2 = arith.constant 0 : index
    %1 = vector.load %arg3[%c0_1, %c0_2] : memref<32x128xf32, #tpu.memory_space<vmem>>, vector<32x128xf32>
    %cst = arith.constant dense<0.000000e+00> : vector<16x128xf32>
    %2 = tpu.matmul %0, %1, %cst {dimension_numbers = #tpu.dot_dimension_numbers<[1], [0], [0], [1], [0, 0, 1, 1], [], []>} : vector<16x32xf32>, vector<32x128xf32>, vector<16x128xf32> -> vector<16x128xf32>
    %c0_3 = arith.constant 0 : index
    %c0_4 = arith.constant 0 : index
    %3 = vector.load %arg4[%c0_3, %c0_4] : memref<1x128xf32, #tpu.memory_space<vmem>>, vector<1x128xf32>
    %4 = vector.broadcast %3 : vector<1x128xf32> to vector<16x128xf32>
    %5 = arith.addf %2, %4 : vector<16x128xf32>
    %c0_5 = arith.constant 0 : index
    %c0_6 = arith.constant 0 : index
    %6 = vector.load %arg5[%c0_5, %c0_6] : memref<16x128xf32, #tpu.memory_space<vmem>>, vector<16x128xf32>
    tpu.vector_store %arg5[%c0_5, %c0_6], %5 {strides = array<i32>} : memref<16x128xf32, #tpu.memory_space<vmem>>, vector<16x128xf32>,
    return
  }
  func.func @transform_0(%arg0: i32, %arg1: i32) -> (i32, i32) {
    %c0_i32 = arith.constant 0 : i32
    %c0_i32_0 = arith.constant 0 : i32
    return %arg0, %c0_i32 : i32, i32
  }
  func.func @transform_1(%arg0: i32, %arg1: i32) -> (i32, i32) {
    %c0_i32 = arith.constant 0 : i32
    %c0_i32_0 = arith.constant 0 : i32
    return %c0_i32, %arg1 : i32, i32
  }
  func.func @transform_2(%arg0: i32, %arg1: i32) -> (i32, i32) {
    %c0_i32 = arith.constant 0 : i32
    %c0_i32_0 = arith.constant 0 : i32
    return %c0_i32, %arg1 : i32, i32
  }
  func.func @transform_3(%arg0: i32, %arg1: i32) -> (i32, i32) {
    %c0_i32 = arith.constant 0 : i32
    return %arg0, %arg1 : i32, i32
  }
}

</mosaic_0001>

<bundles_post_ra>
// kernel: conv1d_pallas.1
= control target key start
LH: loop header
LB: loop body
LE: loop exit
PB: predicated region body
PF: predicated region fallthrough
CT: control target
= control target key end

     0   :  { %vm24_vm0 = vcmask 261120   ;;  %s114_s1 = inlined_call_operand.vmem [shape: f32[32,128], index: 1, kind: input, shape index: {}]   ;;  %s115_s2 = inlined_call_operand.vmem [shape: f32[1,128], index: 2, kind: input, shape index: {}]   ;;  %s116_s0 = inlined_call_operand.vmem [shape: f32[16,32], index: 0, kind: input, shape index: {}]   ;;  %s117_s3 = inlined_call_operand.vmem [shape: f32[16,128], index: 3, kind: output, shape index: {}]  }
   0x1   :  { %v19_v0 = vld [vmem:[%s114_s1 + $0x18] sm:$0xff]  ;;  %v18_v1 = vld [vmem:[%s114_s1 + $0x10] sm:$0xff]  ;;  %v17_v2 = vld [vmem:[%s114_s1 + $0x8] sm:$0xff] }
   0x2   :  { %43 = vmatpush.msra.mxu0 %v19_v0  ;;  %62 = vmatpush.msra.mxu1 %v19_v0  ;;  %v16_v3 = vld [vmem:[%s114_s1] sm:$0xff]  ;;  %v15_v5 = vld [vmem:[%s116_s0 + $0x8] sm:$0xff] }
   0x3   :  { %v14_v4 = vld [vmem:[%s116_s0] sm:$0xff] }
   0x4   :  { %44 = vmatpush.msra.mxu0 %v18_v1  ;;  %63 = vmatpush.msra.mxu1 %v18_v1  ;;  %v66_v6 = vld [vmem:[%s115_s2] ss:$0 sm:$0xff] }
   0x6   :  { %45 = vmatpush.msra.mxu0 %v17_v2  ;;  %64 = vmatpush.msra.mxu1 %v17_v2 }
   0x8   :  { %46 = vmatpush.msra.mxu0 %v16_v3  ;;  %65 = vmatpush.msra.mxu1 %v16_v3 }
   0x9   :  { %60 = vmatmul.msk.f32.vlgmr.msra.gmra.mxu0 %vm24_vm0, %v14_v4  ;;  %61 = vmatmul.msk.f32.vlgmr.msra.gmra.mxu1 %vm24_vm0, %v15_v5 }
  0x86   :  { %v48_v7 = vpop.f32.mrf.mxu0  ;;  %v51_v8 = vpop.f32.mrf.mxu1 }
  0x87   :  { %v49_v9 = vadd.f32 %v66_v6, %v48_v7  ;;  %v52_v10 = vadd.f32 %v66_v6, %v51_v8 }
  0x89   :  { %54 = vst [vmem:[%s117_s3] sm:$0xff] %v49_v9 }
  0x8a   :  { %55 = vst [vmem:[%s117_s3 + $0x8] sm:$0xff] %v52_v10 }

</bundles_post_ra>
